<compile_context>
chip_gen: v5e
topology: v5e:2x2
jax: 0.10.0
libtpu: 0.0.40
codegen_flags: <defaults>
</compile_context>

<pallas_src>
import jax
import jax.numpy as jnp
from jax.experimental import pallas as pl
from jax.experimental.pallas import tpu as pltpu

LANE = 128


def _round_up(a: int, b: int) -> int:
    return (a + b - 1) // b * b


def _largest_aligned_divisor(n: int, cap: int, align: int = LANE) -> int:
    """Largest multiple of `align` that is <= cap and divides n (n % align == 0)."""
    cap = max(align, min(cap, n) // align * align)
    for cand in range(cap, align - 1, -align):
        if n % cand == 0:
            return cand
    return align


def _default_block_bytes() -> int:
    # 8 MiB x blocks fit comfortably in v7x's 64 MiB VMEM (2x double-buffer +
    # scratch < ~20 MiB); on 128 MiB chips (v5e/v6e) use 16 MiB blocks.
    try:
        info = pltpu.get_tpu_info()
        vmem = getattr(info, "vmem_capacity_bytes", 0) or 0
        if vmem >= 128 * 1024 * 1024:
            return 16 * 1024 * 1024
    except Exception:
        pass
    return 8 * 1024 * 1024


def unigram_kernel(logp_ref, x_ref, o_ref, acc_ref):
    # Grid: (V-blocks ["parallel"], T-blocks ["arbitrary" reduction]).
    j = pl.program_id(1)

    @pl.when(j == 0)
    def _init():
        acc_ref[...] = jnp.zeros_like(acc_ref)

    # One MXU dot per x tile, lane-dense (1, t_tile) accumulation.
    acc_ref[...] += jnp.dot(logp_ref[...], x_ref[...],
                            preferred_element_type=jnp.float32)

    # Last T step: single cross-lane reduce, write this V-block's partial.
    @pl.when(j == pl.num_programs(1) - 1)
    def _finalize():
        total = jnp.sum(acc_ref[...], axis=(0, 1), keepdims=True)   # (1, 1)
        o_ref[...] = jnp.broadcast_to(total, o_ref.shape).astype(o_ref.dtype)


def unigram_forward(s, x, *, target_block_bytes: int | None = None,
                    t_tile_cap: int | None = None):
    """s: (V, 1) parameter, x: (V, T) input. Returns (1, 1)."""
    V, T = x.shape
    assert s.shape == (V, 1)

    # Feed x natively (bf16 stays bf16 -> half the HBM bytes); otherwise f32.
    if x.dtype == jnp.bfloat16:
        compute_dtype = jnp.bfloat16
    else:
        if x.dtype != jnp.float32:
            # TODO(synk): int8 x could feed the MXU directly on v5e/v6e.
            x = x.astype(jnp.float32)
        compute_dtype = jnp.float32
    itemsize = jnp.dtype(compute_dtype).itemsize

    # Hoisted (single) log_softmax over the full vocab, done once in XLA.
    logp = jax.nn.log_softmax(s.astype(jnp.float32), axis=0)[:, 0]   # (V,)

    if target_block_bytes is None:
        target_block_bytes = _default_block_bytes()

    Vp = _round_up(V, LANE)
    Tp = _round_up(T, LANE)

    # t_tile: as close to full T as the block budget allows (long contiguous
    # DMA rows, fewest grid steps).  Must be a multiple of 128 dividing Tp.
    t_budget = max(LANE, (target_block_bytes // (LANE * itemsize)) // LANE * LANE)
    t_cap = t_budget if t_tile_cap is None else max(LANE, t_tile_cap // LANE * LANE)
    t_tile = _largest_aligned_divisor(Tp, min(t_cap, Tp), LANE)

    # v_tile: fill the block budget; keep >= 2 V-blocks when possible so the
    # "parallel" axis can feed both v7x TensorCores.  Multiple of 128 dividing Vp.
    v_budget = max(LANE, (target_block_bytes // (t_tile * itemsize)) // LANE * LANE)
    v_cap = min(v_budget, Vp)
    if Vp >= 2 * LANE:
        v_cap = min(v_cap, _round_up(Vp // 2, LANE))
    v_tile = _largest_aligned_divisor(Vp, v_cap, LANE)

    n_v = Vp // v_tile
    n_t = Tp // t_tile

    # Lane-dense logp (1, Vp); padded vocab entries get logp = 0, which is
    # harmless because the corresponding x rows are zero-padded.
    logp_row = jnp.zeros((1, Vp), dtype=compute_dtype).at[0, :V].set(
        logp.astype(compute_dtype))
    if (Vp, Tp) != (V, T):
        x = jnp.pad(x, ((0, Vp - V), (0, Tp - T)))

    x_block_bytes = v_tile * t_tile * itemsize
    need = (2 * x_block_bytes            # double-buffered x tiles
            + 2 * v_tile * itemsize      # double-buffered logp block
            + t_tile * 4                 # accumulator
            + 2 * LANE * 4               # output block
            + (2 << 20))                 # margin
    vmem_limit = int(min(40 * 1024 * 1024, max(need, 4 * 1024 * 1024)))

    cost = pl.CostEstimate(
        flops=2 * Vp * Tp,
        transcendentals=0,
        bytes_accessed=Vp * Tp * itemsize + Vp * itemsize + n_v * LANE * 4,
    )

    partials = pl.pallas_call(
        unigram_kernel,
        out_shape=jax.ShapeDtypeStruct((n_v, 1, LANE), jnp.float32),
        grid_spec=pltpu.PrefetchScalarGridSpec(
            num_scalar_prefetch=0,
            grid=(n_v, n_t),
            in_specs=[
                # This V-block's logp slice, lane-dense, resident across T steps.
                pl.BlockSpec((1, v_tile), lambda i, j: (0, i)),
                # Streamed x tiles (double-buffered by default).
                pl.BlockSpec((v_tile, t_tile), lambda i, j: (i, j)),
            ],
            # One lane-padded partial row per V-block (race-free with "parallel" V).
            out_specs=pl.BlockSpec((1, 1, LANE), lambda i, j: (i, 0, 0)),
            scratch_shapes=[
                pltpu.VMEM((1, t_tile), jnp.float32),   # lane-dense accumulator
            ],
        ),
        compiler_params=pltpu.CompilerParams(
            dimension_semantics=("parallel", "arbitrary"),
            vmem_limit_bytes=vmem_limit,
        ),
        cost_estimate=cost,
    )(logp_row, x)

    # Tiny final reduction over V-block partials done in plain JAX.
    return jnp.sum(partials[:, 0, 0]).reshape(1, 1)


def unigram_reference(s, x):
    logp = jax.nn.log_softmax(s.astype(jnp.float32), axis=0)   # (V, 1)
    return jnp.sum(x.astype(jnp.float32), axis=1, keepdims=True).T @ logp


if __name__ == "__main__":
    key = jax.random.PRNGKey(0)
    k1, k2, k3 = jax.random.split(key, 3)

    # --- Test 1: aligned shapes, grid (2, 1), full-T tiles ------------------
    V, T = 512, 1024
    s = jnp.ones((V, 1), dtype=jnp.float32)                    # module init: ones((V, 1))
    tok = jax.random.randint(k1, (T,), 0, V)
    x = jax.nn.one_hot(tok, V, dtype=jnp.float32).T            # (V, T)

    out = unigram_forward(s, x)
    jax.block_until_ready(out)
    ref = unigram_reference(s, x)
    assert out.shape == (1, 1)
    assert jnp.allclose(out, ref, rtol=1e-5, atol=1e-4), (out, ref)

    # --- Test 2: unaligned shapes exercising the padding path ---------------
    V2, T2 = 380, 630
    s2 = 1.0 + 0.3 * jax.random.normal(k2, (V2, 1), dtype=jnp.float32)
    tok2 = jax.random.randint(k3, (T2,), 0, V2)
    x2 = jax.nn.one_hot(tok2, V2, dtype=jnp.float32).T         # (V2, T2)

    out2 = unigram_forward(s2, x2)
    jax.block_until_ready(out2)
    ref2 = unigram_reference(s2, x2)
    assert out2.shape == (1, 1)
    assert jnp.allclose(out2, ref2, rtol=1e-5, atol=1e-4), (out2, ref2)

    # --- Test 3: force a multi-step T reduction (n_t > 1) to exercise the
    #             accumulator init / finalize path -------------------------
    V3, T3 = 256, 384
    s3 = 1.0 + 0.1 * jax.random.normal(k2, (V3, 1), dtype=jnp.float32)
    x3 = jax.random.uniform(k3, (V3, T3), dtype=jnp.float32)

    out3 = unigram_forward(s3, x3, t_tile_cap=128)
    jax.block_until_ready(out3)
    ref3 = unigram_reference(s3, x3)
    assert out3.shape == (1, 1)
    assert jnp.allclose(out3, ref3, rtol=1e-4, atol=1e-2), (out3, ref3)

    print("KERNEL_OK")
</pallas_src>

<mosaic_0001>
module attributes {stable_mosaic.version = 11 : i64} {
  func.func @unigram_kernel(%arg0: i32, %arg1: i32, %arg2: memref<1x256xf32, #tpu.memory_space<vmem>>, %arg3: memref<256x1024xf32, #tpu.memory_space<vmem>>, %arg4: memref<1x1x128xf32, #tpu.memory_space<vmem>>, %arg5: memref<1x1024xf32, #tpu.memory_space<vmem>>) attributes {dimension_semantics = [#tpu.dimension_semantics<parallel>, #tpu.dimension_semantics<arbitrary>], iteration_bounds = array<i64: 2, 1>, scalar_prefetch = 0 : i64, scratch_operands = 1 : i64, tpu.core_type = #tpu.core_type<tc>, window_params = [{transform_indices = @transform_0, window_bounds = array<i64: 1, 256>}, {transform_indices = @transform_1, window_bounds = array<i64: 256, 1024>}, {transform_indices = @transform_2, window_bounds = array<i64: 1, 1, 128>}]} {
    %c0_i32 = arith.constant 0 : i32
    %0 = arith.cmpi eq, %arg1, %c0_i32 : i32
    %1 = arith.extui %0 : i1 to i32
    %c0_i32_0 = arith.constant 0 : i32
    %2 = arith.cmpi ne, %1, %c0_i32_0 : i32
    scf.if %2 {
      %cst_10 = arith.constant 0.000000e+00 : f32
      %12 = vector.broadcast %cst_10 : f32 to vector<1x1024xf32>
      %c0_11 = arith.constant 0 : index
      %c0_12 = arith.constant 0 : index
      %13 = vector.load %arg5[%c0_11, %c0_12] : memref<1x1024xf32, #tpu.memory_space<vmem>>, vector<1x1024xf32>
      tpu.vector_store %arg5[%c0_11, %c0_12], %12 {strides = array<i32>} : memref<1x1024xf32, #tpu.memory_space<vmem>>, vector<1x1024xf32>,
    } else {
    }
    %c0 = arith.constant 0 : index
    %c0_1 = arith.constant 0 : index
    %3 = vector.load %arg5[%c0, %c0_1] : memref<1x1024xf32, #tpu.memory_space<vmem>>, vector<1x1024xf32>
    %c0_2 = arith.constant 0 : index
    %c0_3 = arith.constant 0 : index
    %4 = vector.load %arg2[%c0_2, %c0_3] : memref<1x256xf32, #tpu.memory_space<vmem>>, vector<1x256xf32>
    %c0_4 = arith.constant 0 : index
    %c0_5 = arith.constant 0 : index
    %5 = vector.load %arg3[%c0_4, %c0_5] : memref<256x1024xf32, #tpu.memory_space<vmem>>, vector<256x1024xf32>
    %cst = arith.constant dense<0.000000e+00> : vector<1x1024xf32>
    %6 = tpu.matmul %4, %5, %cst {dimension_numbers = #tpu.dot_dimension_numbers<[1], [0], [0], [1], [0, 0, 1, 1], [], []>} : vector<1x256xf32>, vector<256x1024xf32>, vector<1x1024xf32> -> vector<1x1024xf32>
    %7 = arith.addf %3, %6 : vector<1x1024xf32>
    %c0_6 = arith.constant 0 : index
    %c0_7 = arith.constant 0 : index
    %8 = vector.load %arg5[%c0_6, %c0_7] : memref<1x1024xf32, #tpu.memory_space<vmem>>, vector<1x1024xf32>
    tpu.vector_store %arg5[%c0_6, %c0_7], %7 {strides = array<i32>} : memref<1x1024xf32, #tpu.memory_space<vmem>>, vector<1x1024xf32>,
    %c0_i32_8 = arith.constant 0 : i32
    %9 = arith.cmpi eq, %arg1, %c0_i32_8 : i32
    %10 = arith.extui %9 : i1 to i32
    %c0_i32_9 = arith.constant 0 : i32
    %11 = arith.cmpi ne, %10, %c0_i32_9 : i32
    scf.if %11 {
      %c0_10 = arith.constant 0 : index
      %c0_11 = arith.constant 0 : index
      %12 = vector.load %arg5[%c0_10, %c0_11] : memref<1x1024xf32, #tpu.memory_space<vmem>>, vector<1x1024xf32>
      %13 = vector.shape_cast %12 : vector<1x1024xf32> to vector<1x1x1024xf32>
      %cst_12 = arith.constant dense<0.000000e+00> : vector<1xf32>
      %14 = vector.multi_reduction <add>, %13, %cst_12 [1, 2] : vector<1x1x1024xf32> to vector<1xf32>
      %15 = vector.shape_cast %14 : vector<1xf32> to vector<1x1x1xf32>
      %16 = vector.extract %15[0, 0, 0] : f32 from vector<1x1x1xf32>
      %17 = vector.broadcast %16 : f32 to vector<1x1xf32>
      %18 = vector.shape_cast %17 : vector<1x1xf32> to vector<1x1x1xf32>
      %19 = vector.broadcast %18 : vector<1x1x1xf32> to vector<1x1x128xf32>
      %c0_13 = arith.constant 0 : index
      %c0_14 = arith.constant 0 : index
      %c0_15 = arith.constant 0 : index
      %20 = vector.load %arg4[%c0_13, %c0_14, %c0_15] : memref<1x1x128xf32, #tpu.memory_space<vmem>>, vector<1x1x128xf32>
      tpu.vector_store %arg4[%c0_13, %c0_14, %c0_15], %19 {strides = array<i32>} : memref<1x1x128xf32, #tpu.memory_space<vmem>>, vector<1x1x128xf32>,
    } else {
    }
    return
  }
  func.func @transform_0(%arg0: i32, %arg1: i32) -> (i32, i32) {
    %c0_i32 = arith.constant 0 : i32
    %c0_i32_0 = arith.constant 0 : i32
    return %c0_i32, %arg0 : i32, i32
  }
  func.func @transform_1(%arg0: i32, %arg1: i32) -> (i32, i32) {
    %c0_i32 = arith.constant 0 : i32
    return %arg0, %arg1 : i32, i32
  }
  func.func @transform_2(%arg0: i32, %arg1: i32) -> (i32, i32, i32) {
    %c0_i32 = arith.constant 0 : i32
    %c0_i32_0 = arith.constant 0 : i32
    %c0_i32_1 = arith.constant 0 : i32
    return %arg0, %c0_i32, %c0_i32_0 : i32, i32, i32
  }
}

</mosaic_0001>

<bundles_post_ra>
// kernel: tpu_custom_call.1
= control target key start
LH: loop header
LB: loop body
LE: loop exit
PB: predicated region body
PF: predicated region fallthrough
CT: control target
= control target key end

     0   :  { %7 = vsyncpa [#allocation4], 0  ;;  %s1690_s0 = inlined_call_operand.hbm [shape: f32[1,512], index: 0, kind: input, shape index: {}]   ;;  %s1691_s1 = inlined_call_operand.hbm [shape: f32[512,1024], index: 1, kind: input, shape index: {}]   ;;  %s1692_s2 = inlined_call_operand.hbm [shape: f32[2,1,128], index: 2, kind: output, shape index: {}]  }
   0x1   :  { %9 = vsyncpa [#allocation4 + $0x1], 0 }
   0x2   :  { %10 = vsyncpa [#allocation7], 0 }
   0x3   :  { %12 = vsyncpa [#allocation7 + $0x1], 0 }
   0x4   :  { %13 = vsyncpa [#allocation5], 0 }
   0x5   :  { %15 = vsyncpa [#allocation5 + $0x1], 0  ;;  %s1255_s9 = smov 0   ;;  %s1257_s10 = smov 0  }
   0x6   :  { %s1259_s11 = smov 0   ;;  %s1261_s12 = smov 0  }
   0x7   :  { %s1263_s13 = smov 0   ;;  %s1265_s14 = smov 0  }
   0x8 LB: > { %s1002_s15 = sadd.s32 4294967295, %s1236_s14   ;;  %s1003_s16 = sadd.s32 4294967294, %s1236_s14   ;;  %s1236_s14 = sphi %s1265_s14, %s21_s14   ;;  %s1232_s13 = sphi %s1263_s13, %s1702_s13   ;;  %s1228_s12 = sphi %s1261_s12, %s1701_s12   ;;  %s1224_s11 = sphi %s1259_s11, %s1700_s11   ;;  %s1220_s10 = sphi %s1257_s10, %s1699_s10   ;;  %s1216_s9 = sphi %s1255_s9, %s1698_s9  }
   0x9   : > { %s33_s17 = sadd.s32 1, %s1232_s13  ;;  %s40_s18 = sadd.s32 1, %s1224_s11 }
   0xa   : > { %p35_p0 = scmp.ge.s32.totalorder %s33_s17, 2  ;;  %p47_p1 = scmp.ne.s32.totalorder %s1224_s11, %s1220_s10 }
   0xb   : > { %p48_p2 = scmp.eq.s32.totalorder %s1236_s14, 0  ;;  %p53_p3 = scmp.ne.s32.totalorder %s1220_s10, %s1216_s9 }
   0xc   : > { %s1704_s17 = smov (%p35_p0, %s33_s17), 0  ;;  %p54_p5 = scmp.eq.s32.totalorder %s1002_s15, 0 }
   0xd   : > { %p1296_p4 = por %p48_p2, %p47_p1  ;;  %s37_s20 = ssub.s32 %s1232_s13, %s1704_s17 }
   0xe   : > { %p105_p6 = scmp.eq.s32.totalorder %s1002_s15, 1  ;;  %p38_p7 = scmp.eq.s32.totalorder %s37_s20, 0 }
   0xf   : > { %p1302_p8 = por %p54_p5, %p53_p3  ;;  %p111_p10 = scmp.eq.s32.totalorder %s1003_s16, 1 }
  0x10   : > { %p1306_p9 = por %p105_p6, %p47_p1  ;;  %p1005_p12 = scmp.ge.s32.totalorder %s1236_s14, 2 }
  0x11   : > { %s1311_s23 = scalar_select %p38_p7, %s1224_s11, %s40_s18  }
  0x12   : > { %p1313_p11 = por %p111_p10, %p53_p3  ;;  %p1038_p13 = scmp.lt.s32.totalorder %s1236_s14, 2 }
  0x13   : > { %s1320_s25 = sand.u32 1, %s1224_s11   ;;  %s1007_s27 = sshll.u32 %s1232_s13, 1 }
  0x14   : > { %s1006_s26 = sshll.u32 %s1320_s25, 1  ;;  %s139_s30 = scalar_lea.hbm %s1690_s0, %s1007_s27 }
  0x15   : > { %s135_s3 = scalar_lea.vmem [#allocation3], %s1006_s26  ;;  %s141_s5 = sshll.u32 %s139_s30, 4  ;;  %s142_s5 = int_to_ptr.hbm [resolvable:$true] %s141_s5 }
  0x16   : > { %s143_s4 = sshll.u32 %s135_s3, 4  ;;  %p1329_p0 = pnand %p1038_p13, %p1296_p4  ;;  %s144_s4 = int_to_ptr.vmem [resolvable:$true] %s143_s4 }
  0x17   : > { %p1012_p1 = scmp.ge.s32.totalorder %s1236_s14, 1  ;;  %p173_p2 = scmp.lt.s32.totalorder %s1236_s14, 3 }
  0x18   : > { %s132_s7 = scalar_lea.sflag [#allocation4], %s1320_s25  ;;  %s1008_s8 = sshll.u32 %s1320_s25, 11 }
  0x19   : > { %1030 = dma.hbm_to_vmem [thread:$0]  (!%p1329_p0), %s142_s5, 32, %s144_s4, %s132_s7  }
  0x1a   : > { %p174_p3 = pnand %p1012_p1, %p173_p2  ;;  %s1018_s15 = sshll.u32 %s1232_s13, 11 }
  0x1b   : > { %s162_s20 = scalar_lea.hbm %s1691_s1, %s1018_s15  ;;  %s154_s26 = scalar_lea.vmem [#allocation6], %s1008_s8 }
  0x1c   : > { %s165_s19 = sshll.u32 %s154_s26, 4  ;;  %s163_s27 = sshll.u32 %s162_s20, 4  ;;  %s166_s19 = int_to_ptr.vmem [resolvable:$true] %s165_s19  ;;  %s164_s27 = int_to_ptr.hbm [resolvable:$true] %s163_s27 }
  0x1d   : > { %s151_s28 = scalar_lea.sflag [#allocation7], %s1320_s25  ;;  %s1238_s29 = smov 1024  }
  0x1e   : > { %s1239_s30 = smov 64   ;;  %177 = sbr.rel (%p174_p3) target bundleno = 510 (0x1fe), region = 28 }
  0x1f   : > { %1033 = dma.hbm_to_vmem [thread:$0]  (!%p1329_p0), %s164_s27, 32768, %s166_s19, %s151_s28, %s1238_s29, %s1238_s29, %s1239_s30  }
  0x20   : > { %s1347_s3 = sand.u32 (!%p174_p3), 1, %s1220_s10  }
  0x21   : > { %s1013_s4 = sshll.u32 (!%p174_p3), %s1347_s3, 1  ;;  %s180_s5 = scalar_lea.sflag (!%p174_p3), [#allocation4], %s1347_s3 }
  0x22   : > { %s1351_s7 = scalar_lea.vmem (!%p174_p3), [#allocation3], %s1013_s4 }
  0x23   : > { %1203 = dma.done.wait (%p1302_p8), %s180_s5, 32  }
  0x24   : > { %1205 = vsyncadd (%p1302_p8), %s180_s5, 4294967264  ;;  %s1014_s25 = sshll.u32 %s1347_s3, 11  ;;  %s190_s6 = scalar_lea.sflag [#allocation7], %s1347_s3 }
  0x25   : > { %s1359_s8 = scalar_lea.vmem [#allocation6], %s1014_s25 }
  0x26   : > { %1207 = dma.done.wait (%p1302_p8), %s190_s6, 32768  }
  0x27   : > { %1209 = vsyncadd (%p1302_p8), %s190_s6, 4294934528  ;;  %v350_v0 = vld [vmem:[%s1359_s8 + $0x3c8] sm:$0xff]  ;;  %v349_v6 = vld [vmem:[%s1359_s8 + $0x3c0] sm:$0xff]  ;;  %vm827_vm0 = vcmask 1042434   ;;  %vm825_vm1 = vcmask 1040384   ;;  %vm831_vm2 = vcmask 1044484   ;;  %s898_s16 = scalar_lea.hbm %s1692_s2, %s1228_s12 }
  0x28   : > { %v478_v1 = vld [vmem:[%s1359_s8 + $0x7c8] sm:$0xff]  ;;  %530 = vmatpush.msra.mxu2 %v350_v0  ;;  %v477_v7 = vld [vmem:[%s1359_s8 + $0x7c0] sm:$0xff]  ;;  %490 = vmatpush.msra.mxu0 %v349_v6  ;;  %v352_v60 = vld [vmem:[%s1359_s8 + $0x3d8] sm:$0xff]  ;;  %vm833_vm3 = vcmask 1046534   ;;  %vm829_vm4 = vcmask 1041408   ;;  %vm835_vm5 = vcmask 1045508  }
  0x29   : > { %v342_v2 = vld [vmem:[%s1359_s8 + $0x388] sm:$0xff]  ;;  %550 = vmatpush.msra.mxu3 %v478_v1  ;;  %v341_v8 = vld [vmem:[%s1359_s8 + $0x380] sm:$0xff]  ;;  %510 = vmatpush.msra.mxu1 %v477_v7  ;;  %v480_v61 = vld [vmem:[%s1359_s8 + $0x7d8] sm:$0xff]  ;;  %vm837_vm6 = vcmask 1043456   ;;  %s218_s18 = scalar_lea.vmem [#allocation8], %s1347_s3  ;;  %s902_s26 = sshll.u32 %s898_s16, 4  ;;  %s903_s26 = int_to_ptr.hbm [resolvable:$true] %s902_s26 }
  0x2a   : > { %v470_v3 = vld [vmem:[%s1359_s8 + $0x788] sm:$0xff]  ;;  %531 = vmatpush.msra.mxu2 %v342_v2  ;;  %v469_v9 = vld [vmem:[%s1359_s8 + $0x780] sm:$0xff]  ;;  %491 = vmatpush.msra.mxu0 %v341_v8  ;;  %v344_v0 = vld [vmem:[%s1359_s8 + $0x398] sm:$0xff]  ;;  %s900_s20 = sshll.u32 %s218_s18, 4  ;;  %s890_s27 = scalar_lea.sflag [#allocation5], %s1347_s3  ;;  %s901_s20 = int_to_ptr.vmem [resolvable:$true] %s900_s20 }
  0x2b   : > { %v334_v4 = vld [vmem:[%s1359_s8 + $0x348] sm:$0xff]  ;;  %551 = vmatpush.msra.mxu3 %v470_v3  ;;  %v333_v12 = vld [vmem:[%s1359_s8 + $0x340] sm:$0xff]  ;;  %511 = vmatpush.msra.mxu1 %v469_v9  ;;  %v472_v1 = vld [vmem:[%s1359_s8 + $0x798] sm:$0xff]  ;;  %s1164_s28 = sshra.s32 %s903_s26, 4  ;;  %s1170_s12 = scalar_lea.hbm %s1692_s2, 2  ;;  %s1165_s28 = int_to_ptr.hbm [resolvable:$true] %s1164_s28 }
  0x2c   : > { %v462_v5 = vld [vmem:[%s1359_s8 + $0x748] sm:$0xff]  ;;  %532 = vmatpush.msra.mxu2 %v334_v4  ;;  %v461_v13 = vld [vmem:[%s1359_s8 + $0x740] sm:$0xff]  ;;  %492 = vmatpush.msra.mxu0 %v333_v12  ;;  %v336_v4 = vld [vmem:[%s1359_s8 + $0x358] sm:$0xff]  ;;  %s1166_s29 = scalar_lea.hbm %s1165_s28, 1  ;;  %p1171_p7 = scmp.lt.s32.totalorder %s1165_s28, %s1692_s2 }
  0x2d   : > { %v326_v10 = vld [vmem:[%s1359_s8 + $0x308] sm:$0xff]  ;;  %552 = vmatpush.msra.mxu3 %v462_v5  ;;  %v325_v16 = vld [vmem:[%s1359_s8 + $0x300] sm:$0xff]  ;;  %512 = vmatpush.msra.mxu1 %v461_v13  ;;  %v464_v5 = vld [vmem:[%s1359_s8 + $0x758] sm:$0xff]  ;;  %p1167_p4 = scmp.ne.s32.totalorder %s1165_s28, %s1166_s29  ;;  %p1172_p8 = scmp.lt.s32.totalorder %s1170_s12, %s1166_s29 }
  0x2e   : > { %v454_v11 = vld [vmem:[%s1359_s8 + $0x708] sm:$0xff]  ;;  %533 = vmatpush.msra.mxu2 %v326_v10  ;;  %v453_v17 = vld [vmem:[%s1359_s8 + $0x700] sm:$0xff]  ;;  %493 = vmatpush.msra.mxu0 %v325_v16  ;;  %v351_v6 = vld [vmem:[%s1359_s8 + $0x3d0] sm:$0xff] }
  0x2f   : > { %v318_v14 = vld [vmem:[%s1359_s8 + $0x2c8] sm:$0xff]  ;;  %553 = vmatpush.msra.mxu3 %v454_v11  ;;  %v317_v20 = vld [vmem:[%s1359_s8 + $0x2c0] sm:$0xff]  ;;  %513 = vmatpush.msra.mxu1 %v453_v17  ;;  %v479_v7 = vld [vmem:[%s1359_s8 + $0x7d0] sm:$0xff]  ;;  %p1168_p5 = pnand %p1167_p4, %p1306_p9  ;;  %p1173_p10 = por %p1172_p8, %p1171_p7 }
  0x30   : > { %v446_v15 = vld [vmem:[%s1359_s8 + $0x6c8] sm:$0xff]  ;;  %534 = vmatpush.msra.mxu2 %v318_v14  ;;  %v445_v21 = vld [vmem:[%s1359_s8 + $0x6c0] sm:$0xff]  ;;  %494 = vmatpush.msra.mxu0 %v317_v20  ;;  %v328_v8 = vld [vmem:[%s1359_s8 + $0x318] sm:$0xff] }
  0x31   : > { %v310_v18 = vld [vmem:[%s1359_s8 + $0x288] sm:$0xff]  ;;  %554 = vmatpush.msra.mxu3 %v446_v15  ;;  %v309_v24 = vld [vmem:[%s1359_s8 + $0x280] sm:$0xff]  ;;  %514 = vmatpush.msra.mxu1 %v445_v21  ;;  %v456_v9 = vld [vmem:[%s1359_s8 + $0x718] sm:$0xff]  ;;  %p1169_p6 = pneg %p1168_p5 }
  0x32   : > { %v438_v19 = vld [vmem:[%s1359_s8 + $0x688] sm:$0xff]  ;;  %535 = vmatpush.msra.mxu2 %v310_v18  ;;  %v437_v25 = vld [vmem:[%s1359_s8 + $0x680] sm:$0xff]  ;;  %495 = vmatpush.msra.mxu0 %v309_v24  ;;  %v343_v10 = vld [vmem:[%s1359_s8 + $0x390] sm:$0xff] }
  0x33   : > { %v302_v22 = vld [vmem:[%s1359_s8 + $0x248] sm:$0xff]  ;;  %555 = vmatpush.msra.mxu3 %v438_v19  ;;  %v301_v28 = vld [vmem:[%s1359_s8 + $0x240] sm:$0xff]  ;;  %515 = vmatpush.msra.mxu1 %v437_v25  ;;  %v471_v11 = vld [vmem:[%s1359_s8 + $0x790] sm:$0xff]  ;;  %p1174_p13 = pnand %p1173_p10, %p1169_p6 }
  0x34   : > { %v430_v23 = vld [vmem:[%s1359_s8 + $0x648] sm:$0xff]  ;;  %536 = vmatpush.msra.mxu2 %v302_v22  ;;  %v429_v29 = vld [vmem:[%s1359_s8 + $0x640] sm:$0xff]  ;;  %496 = vmatpush.msra.mxu0 %v301_v28  ;;  %v320_v12 = vld [vmem:[%s1359_s8 + $0x2d8] sm:$0xff] }
  0x35   : > { %v294_v26 = vld [vmem:[%s1359_s8 + $0x208] sm:$0xff]  ;;  %556 = vmatpush.msra.mxu3 %v430_v23  ;;  %v293_v32 = vld [vmem:[%s1359_s8 + $0x200] sm:$0xff]  ;;  %516 = vmatpush.msra.mxu1 %v429_v29  ;;  %v448_v13 = vld [vmem:[%s1359_s8 + $0x6d8] sm:$0xff] }
  0x36   : > { %v422_v27 = vld [vmem:[%s1359_s8 + $0x608] sm:$0xff]  ;;  %537 = vmatpush.msra.mxu2 %v294_v26  ;;  %v421_v33 = vld [vmem:[%s1359_s8 + $0x600] sm:$0xff]  ;;  %497 = vmatpush.msra.mxu0 %v293_v32  ;;  %v335_v14 = vld [vmem:[%s1359_s8 + $0x350] sm:$0xff] }
  0x37   : > { %v286_v30 = vld [vmem:[%s1359_s8 + $0x1c8] sm:$0xff]  ;;  %557 = vmatpush.msra.mxu3 %v422_v27  ;;  %v285_v36 = vld [vmem:[%s1359_s8 + $0x1c0] sm:$0xff]  ;;  %517 = vmatpush.msra.mxu1 %v421_v33  ;;  %v463_v15 = vld [vmem:[%s1359_s8 + $0x750] sm:$0xff] }
  0x38   : > { %v414_v31 = vld [vmem:[%s1359_s8 + $0x5c8] sm:$0xff]  ;;  %538 = vmatpush.msra.mxu2 %v286_v30  ;;  %v413_v37 = vld [vmem:[%s1359_s8 + $0x5c0] sm:$0xff]  ;;  %498 = vmatpush.msra.mxu0 %v285_v36  ;;  %v312_v16 = vld [vmem:[%s1359_s8 + $0x298] sm:$0xff] }
  0x39   : > { %v278_v34 = vld [vmem:[%s1359_s8 + $0x188] sm:$0xff]  ;;  %558 = vmatpush.msra.mxu3 %v414_v31  ;;  %v277_v40 = vld [vmem:[%s1359_s8 + $0x180] sm:$0xff]  ;;  %518 = vmatpush.msra.mxu1 %v413_v37  ;;  %v440_v17 = vld [vmem:[%s1359_s8 + $0x698] sm:$0xff] }
  0x3a   : > { %v406_v35 = vld [vmem:[%s1359_s8 + $0x588] sm:$0xff]  ;;  %539 = vmatpush.msra.mxu2 %v278_v34  ;;  %v405_v41 = vld [vmem:[%s1359_s8 + $0x580] sm:$0xff]  ;;  %499 = vmatpush.msra.mxu0 %v277_v40  ;;  %v327_v18 = vld [vmem:[%s1359_s8 + $0x310] sm:$0xff] }
  0x3b   : > { %v270_v38 = vld [vmem:[%s1359_s8 + $0x148] sm:$0xff]  ;;  %559 = vmatpush.msra.mxu3 %v406_v35  ;;  %v269_v44 = vld [vmem:[%s1359_s8 + $0x140] sm:$0xff]  ;;  %519 = vmatpush.msra.mxu1 %v405_v41  ;;  %v455_v19 = vld [vmem:[%s1359_s8 + $0x710] sm:$0xff] }
  0x3c   : > { %v398_v39 = vld [vmem:[%s1359_s8 + $0x548] sm:$0xff]  ;;  %540 = vmatpush.msra.mxu2 %v270_v38  ;;  %v397_v45 = vld [vmem:[%s1359_s8 + $0x540] sm:$0xff]  ;;  %500 = vmatpush.msra.mxu0 %v269_v44  ;;  %v304_v20 = vld [vmem:[%s1359_s8 + $0x258] sm:$0xff] }
  0x3d   : > { %v262_v42 = vld [vmem:[%s1359_s8 + $0x108] sm:$0xff]  ;;  %560 = vmatpush.msra.mxu3 %v398_v39  ;;  %v261_v48 = vld [vmem:[%s1359_s8 + $0x100] sm:$0xff]  ;;  %520 = vmatpush.msra.mxu1 %v397_v45  ;;  %v432_v21 = vld [vmem:[%s1359_s8 + $0x658] sm:$0xff] }
  0x3e   : > { %v390_v43 = vld [vmem:[%s1359_s8 + $0x508] sm:$0xff]  ;;  %541 = vmatpush.msra.mxu2 %v262_v42  ;;  %v389_v49 = vld [vmem:[%s1359_s8 + $0x500] sm:$0xff]  ;;  %501 = vmatpush.msra.mxu0 %v261_v48  ;;  %v319_v22 = vld [vmem:[%s1359_s8 + $0x2d0] sm:$0xff] }
  0x3f   : > { %v254_v46 = vld [vmem:[%s1359_s8 + $0xc8] sm:$0xff]  ;;  %561 = vmatpush.msra.mxu3 %v390_v43  ;;  %v253_v52 = vld [vmem:[%s1359_s8 + $0xc0] sm:$0xff]  ;;  %521 = vmatpush.msra.mxu1 %v389_v49  ;;  %v447_v23 = vld [vmem:[%s1359_s8 + $0x6d0] sm:$0xff] }
  0x40   : > { %v382_v47 = vld [vmem:[%s1359_s8 + $0x4c8] sm:$0xff]  ;;  %542 = vmatpush.msra.mxu2 %v254_v46  ;;  %v381_v53 = vld [vmem:[%s1359_s8 + $0x4c0] sm:$0xff]  ;;  %502 = vmatpush.msra.mxu0 %v253_v52  ;;  %v296_v24 = vld [vmem:[%s1359_s8 + $0x218] sm:$0xff] }
  0x41   : > { %v246_v50 = vld [vmem:[%s1359_s8 + $0x88] sm:$0xff]  ;;  %562 = vmatpush.msra.mxu3 %v382_v47  ;;  %v245_v56 = vld [vmem:[%s1359_s8 + $0x80] sm:$0xff]  ;;  %522 = vmatpush.msra.mxu1 %v381_v53  ;;  %v424_v25 = vld [vmem:[%s1359_s8 + $0x618] sm:$0xff] }
  0x42   : > { %v374_v51 = vld [vmem:[%s1359_s8 + $0x488] sm:$0xff]  ;;  %543 = vmatpush.msra.mxu2 %v246_v50  ;;  %v373_v57 = vld [vmem:[%s1359_s8 + $0x480] sm:$0xff]  ;;  %503 = vmatpush.msra.mxu0 %v245_v56  ;;  %v311_v26 = vld [vmem:[%s1359_s8 + $0x290] sm:$0xff] }
  0x43   : > { %v238_v54 = vld [vmem:[%s1359_s8 + $0x48] sm:$0xff]  ;;  %563 = vmatpush.msra.mxu3 %v374_v51  ;;  %523 = vmatpush.msra.mxu1 %v373_v57  ;;  %v237_v62 = vld [vmem:[%s1359_s8 + $0x40] sm:$0xff]  ;;  %v439_v27 = vld [vmem:[%s1359_s8 + $0x690] sm:$0xff] }
  0x44   : > { %v366_v55 = vld [vmem:[%s1359_s8 + $0x448] sm:$0xff]  ;;  %544 = vmatpush.msra.mxu2 %v238_v54  ;;  %v365_v63 = vld [vmem:[%s1359_s8 + $0x440] sm:$0xff]  ;;  %504 = vmatpush.msra.mxu0 %v237_v62  ;;  %v288_v28 = vld [vmem:[%s1359_s8 + $0x1d8] sm:$0xff] }
  0x45   : > { %v230_v58 = vld [vmem:[%s1359_s8 + $0x8] sm:$0xff]  ;;  %564 = vmatpush.msra.mxu3 %v366_v55  ;;  %v229_v2 = vld [vmem:[%s1359_s8] sm:$0xff]  ;;  %524 = vmatpush.msra.mxu1 %v365_v63  ;;  %v416_v29 = vld [vmem:[%s1359_s8 + $0x5d8] sm:$0xff] }
  0x46   : > { %v358_v59 = vld [vmem:[%s1359_s8 + $0x408] sm:$0xff]  ;;  %545 = vmatpush.msra.mxu2 %v230_v58  ;;  %v357_v3 = vld [vmem:[%s1359_s8 + $0x400] sm:$0xff]  ;;  %505 = vmatpush.msra.mxu0 %v229_v2  ;;  %v303_v30 = vld [vmem:[%s1359_s8 + $0x250] sm:$0xff] }
  0x47   : > { %565 = vmatpush.msra.mxu3 %v358_v59  ;;  %525 = vmatpush.msra.mxu1 %v357_v3  ;;  %v431_v31 = vld [vmem:[%s1359_s8 + $0x650] sm:$0xff]  ;;  %v280_v32 = vld [vmem:[%s1359_s8 + $0x198] sm:$0xff]  ;;  %v482_v62 = vld [vmem:[%s1359_s8 + $0x7e8] sm:$0xff] }
  0x48   : > { %610 = vmatpush.msrb.mxu2 %v352_v60  ;;  %570 = vmatpush.msrb.mxu0 %v351_v6  ;;  %v408_v33 = vld [vmem:[%s1359_s8 + $0x598] sm:$0xff]  ;;  %v295_v34 = vld [vmem:[%s1359_s8 + $0x210] sm:$0xff]  ;;  %v474_v2 = vld [vmem:[%s1359_s8 + $0x7a8] sm:$0xff] }
  0x49   : > { %630 = vmatpush.msrb.mxu3 %v480_v61  ;;  %590 = vmatpush.msrb.mxu1 %v479_v7  ;;  %v423_v35 = vld [vmem:[%s1359_s8 + $0x610] sm:$0xff]  ;;  %v228_v36 = vld [vmem:[%s1351_s7] sm:$0x3]  ;;  %v354_v61 = vld [vmem:[%s1359_s8 + $0x3e8] sm:$0xff] }
  0x4a   : > { %611 = vmatpush.msrb.mxu2 %v344_v0  ;;  %571 = vmatpush.msrb.mxu0 %v343_v10  ;;  %v272_v37 = vld [vmem:[%s1359_s8 + $0x158] sm:$0xff]  ;;  %v287_v39 = vld [vmem:[%s1359_s8 + $0x1d0] sm:$0xff]  ;;  %v1472_v43 = vperm.slane %v228_v36, 0  ;;  %v1474_v44 = vperm.slane %v228_v36, 1  ;;  %v466_v6 = vld [vmem:[%s1359_s8 + $0x768] sm:$0xff] }
  0x4b   : > { %631 = vmatpush.msrb.mxu3 %v472_v1  ;;  %591 = vmatpush.msrb.mxu1 %v471_v11  ;;  %v400_v38 = vld [vmem:[%s1359_s8 + $0x558] sm:$0xff]  ;;  %v415_v40 = vld [vmem:[%s1359_s8 + $0x5d0] sm:$0xff]  ;;  %v346_v1 = vld [vmem:[%s1359_s8 + $0x3a8] sm:$0xff] }
  0x4c   : > { %612 = vmatpush.msrb.mxu2 %v336_v4  ;;  %572 = vmatpush.msrb.mxu0 %v335_v14  ;;  %v264_v41 = vld [vmem:[%s1359_s8 + $0x118] sm:$0xff]  ;;  %v279_v45 = vld [vmem:[%s1359_s8 + $0x190] sm:$0xff]  ;;  %v481_v10 = vld [vmem:[%s1359_s8 + $0x7e0] sm:$0xff] }
  0x4d   : > { %632 = vmatpush.msrb.mxu3 %v464_v5  ;;  %592 = vmatpush.msrb.mxu1 %v463_v15  ;;  %v392_v42 = vld [vmem:[%s1359_s8 + $0x518] sm:$0xff]  ;;  %v407_v46 = vld [vmem:[%s1359_s8 + $0x590] sm:$0xff]  ;;  %v338_v5 = vld [vmem:[%s1359_s8 + $0x368] sm:$0xff] }
  0x4e   : > { %613 = vmatpush.msrb.mxu2 %v328_v8  ;;  %573 = vmatpush.msrb.mxu0 %v327_v18  ;;  %v256_v47 = vld [vmem:[%s1359_s8 + $0xd8] sm:$0xff]  ;;  %v271_v49 = vld [vmem:[%s1359_s8 + $0x150] sm:$0xff]  ;;  %v330_v11 = vld [vmem:[%s1359_s8 + $0x328] sm:$0xff] }
  0x4f   : > { %633 = vmatpush.msrb.mxu3 %v456_v9  ;;  %593 = vmatpush.msrb.mxu1 %v455_v19  ;;  %v384_v48 = vld [vmem:[%s1359_s8 + $0x4d8] sm:$0xff]  ;;  %v399_v50 = vld [vmem:[%s1359_s8 + $0x550] sm:$0xff]  ;;  %v353_v9 = vld [vmem:[%s1359_s8 + $0x3e0] sm:$0xff] }
  0x50   : > { %614 = vmatpush.msrb.mxu2 %v320_v12  ;;  %574 = vmatpush.msrb.mxu0 %v319_v22  ;;  %v248_v51 = vld [vmem:[%s1359_s8 + $0x98] sm:$0xff]  ;;  %v263_v53 = vld [vmem:[%s1359_s8 + $0x110] sm:$0xff]  ;;  %v458_v12 = vld [vmem:[%s1359_s8 + $0x728] sm:$0xff] }
  0x51   : > { %634 = vmatpush.msrb.mxu3 %v448_v13  ;;  %594 = vmatpush.msrb.mxu1 %v447_v23  ;;  %v376_v52 = vld [vmem:[%s1359_s8 + $0x498] sm:$0xff]  ;;  %v391_v54 = vld [vmem:[%s1359_s8 + $0x510] sm:$0xff]  ;;  %v345_v13 = vld [vmem:[%s1359_s8 + $0x3a0] sm:$0xff] }
  0x52   : > { %615 = vmatpush.msrb.mxu2 %v312_v16  ;;  %575 = vmatpush.msrb.mxu0 %v311_v26  ;;  %v240_v55 = vld [vmem:[%s1359_s8 + $0x58] sm:$0xff]  ;;  %v255_v57 = vld [vmem:[%s1359_s8 + $0xd0] sm:$0xff]  ;;  %v473_v14 = vld [vmem:[%s1359_s8 + $0x7a0] sm:$0xff] }
  0x53   : > { %635 = vmatpush.msrb.mxu3 %v440_v17  ;;  %595 = vmatpush.msrb.mxu1 %v439_v27  ;;  %v368_v56 = vld [vmem:[%s1359_s8 + $0x458] sm:$0xff]  ;;  %v383_v58 = vld [vmem:[%s1359_s8 + $0x4d0] sm:$0xff]  ;;  %v322_v15 = vld [vmem:[%s1359_s8 + $0x2e8] sm:$0xff] }
  0x54   : > { %616 = vmatpush.msrb.mxu2 %v304_v20  ;;  %576 = vmatpush.msrb.mxu0 %v303_v30  ;;  %v232_v59 = vld [vmem:[%s1359_s8 + $0x18] sm:$0xff]  ;;  %v247_v63 = vld [vmem:[%s1359_s8 + $0x90] sm:$0xff]  ;;  %v450_v16 = vld [vmem:[%s1359_s8 + $0x6e8] sm:$0xff] }
  0x55   : > { %636 = vmatpush.msrb.mxu3 %v432_v21  ;;  %596 = vmatpush.msrb.mxu1 %v431_v31  ;;  %v360_v60 = vld [vmem:[%s1359_s8 + $0x418] sm:$0xff]  ;;  %v375_v0 = vld [vmem:[%s1359_s8 + $0x490] sm:$0xff]  ;;  %v337_v17 = vld [vmem:[%s1359_s8 + $0x360] sm:$0xff] }
  0x56   : > { %617 = vmatpush.msrb.mxu2 %v296_v24  ;;  %577 = vmatpush.msrb.mxu0 %v295_v34  ;;  %v239_v3 = vld [vmem:[%s1359_s8 + $0x50] sm:$0xff]  ;;  %v465_v18 = vld [vmem:[%s1359_s8 + $0x760] sm:$0xff]  ;;  %v314_v19 = vld [vmem:[%s1359_s8 + $0x2a8] sm:$0xff] }
  0x57   : > { %637 = vmatpush.msrb.mxu3 %v424_v25  ;;  %597 = vmatpush.msrb.mxu1 %v423_v35  ;;  %v367_v4 = vld [vmem:[%s1359_s8 + $0x450] sm:$0xff]  ;;  %v442_v20 = vld [vmem:[%s1359_s8 + $0x6a8] sm:$0xff]  ;;  %v329_v21 = vld [vmem:[%s1359_s8 + $0x320] sm:$0xff] }
  0x58   : > { %618 = vmatpush.msrb.mxu2 %v288_v28  ;;  %578 = vmatpush.msrb.mxu0 %v287_v39  ;;  %v231_v7 = vld [vmem:[%s1359_s8 + $0x10] sm:$0xff]  ;;  %v457_v22 = vld [vmem:[%s1359_s8 + $0x720] sm:$0xff]  ;;  %v306_v23 = vld [vmem:[%s1359_s8 + $0x268] sm:$0xff] }
  0x59   : > { %638 = vmatpush.msrb.mxu3 %v416_v29  ;;  %598 = vmatpush.msrb.mxu1 %v415_v40  ;;  %v359_v8 = vld [vmem:[%s1359_s8 + $0x410] sm:$0xff]  ;;  %v434_v24 = vld [vmem:[%s1359_s8 + $0x668] sm:$0xff]  ;;  %v321_v25 = vld [vmem:[%s1359_s8 + $0x2e0] sm:$0xff] }
  0x5a   : > { %619 = vmatpush.msrb.mxu2 %v280_v32  ;;  %566 = vmatmul.f32.vlgmr.msra.gmra.mxu3 %v1474_v44  ;;  %v449_v26 = vld [vmem:[%s1359_s8 + $0x6e0] sm:$0xff]  ;;  %v298_v27 = vld [vmem:[%s1359_s8 + $0x228] sm:$0xff] }
  0x5b   : > { %639 = vmatpush.msrb.mxu3 %v408_v33  ;;  %546 = vmatmul.f32.vlgmr.msra.gmra.mxu2 %v1472_v43  ;;  %v426_v28 = vld [vmem:[%s1359_s8 + $0x628] sm:$0xff]  ;;  %v313_v29 = vld [vmem:[%s1359_s8 + $0x2a0] sm:$0xff] }
  0x5c   : > { %620 = vmatpush.msrb.mxu2 %v272_v37  ;;  %579 = vmatpush.msrb.mxu0 %v279_v45  ;;  %v441_v30 = vld [vmem:[%s1359_s8 + $0x6a0] sm:$0xff]  ;;  %v290_v31 = vld [vmem:[%s1359_s8 + $0x1e8] sm:$0xff] }
  0x5d   : > { %640 = vmatpush.msrb.mxu3 %v400_v38  ;;  %599 = vmatpush.msrb.mxu1 %v407_v46  ;;  %v418_v32 = vld [vmem:[%s1359_s8 + $0x5e8] sm:$0xff]  ;;  %v305_v33 = vld [vmem:[%s1359_s8 + $0x260] sm:$0xff] }
  0x5e   : > { %621 = vmatpush.msrb.mxu2 %v264_v41  ;;  %580 = vmatpush.msrb.mxu0 %v271_v49  ;;  %v433_v34 = vld [vmem:[%s1359_s8 + $0x660] sm:$0xff]  ;;  %v282_v35 = vld [vmem:[%s1359_s8 + $0x1a8] sm:$0xff] }
  0x5f   : > { %641 = vmatpush.msrb.mxu3 %v392_v42  ;;  %600 = vmatpush.msrb.mxu1 %v399_v50  ;;  %v410_v36 = vld [vmem:[%s1359_s8 + $0x5a8] sm:$0xff]  ;;  %v297_v37 = vld [vmem:[%s1359_s8 + $0x220] sm:$0xff] }
  0x60   : > { %622 = vmatpush.msrb.mxu2 %v256_v47  ;;  %581 = vmatpush.msrb.mxu0 %v263_v53  ;;  %v425_v38 = vld [vmem:[%s1359_s8 + $0x620] sm:$0xff]  ;;  %v274_v39 = vld [vmem:[%s1359_s8 + $0x168] sm:$0xff] }
  0x61   : > { %642 = vmatpush.msrb.mxu3 %v384_v48  ;;  %601 = vmatpush.msrb.mxu1 %v391_v54  ;;  %v402_v40 = vld [vmem:[%s1359_s8 + $0x568] sm:$0xff]  ;;  %v289_v41 = vld [vmem:[%s1359_s8 + $0x1e0] sm:$0xff] }
  0x62   : > { %623 = vmatpush.msrb.mxu2 %v248_v51  ;;  %506 = vmatmul.f32.vlgmr.msra.gmra.mxu0 %v1472_v43  ;;  %v417_v42 = vld [vmem:[%s1359_s8 + $0x5e0] sm:$0xff]  ;;  %v266_v45 = vld [vmem:[%s1359_s8 + $0x128] sm:$0xff] }
  0x63   : > { %643 = vmatpush.msrb.mxu3 %v376_v52  ;;  %526 = vmatmul.f32.vlgmr.msra.gmra.mxu1 %v1474_v44  ;;  %v394_v46 = vld [vmem:[%s1359_s8 + $0x528] sm:$0xff]  ;;  %v281_v47 = vld [vmem:[%s1359_s8 + $0x1a0] sm:$0xff] }
  0x64   : > { %624 = vmatpush.msrb.mxu2 %v240_v55  ;;  %582 = vmatpush.msrb.mxu0 %v255_v57  ;;  %v409_v48 = vld [vmem:[%s1359_s8 + $0x5a0] sm:$0xff]  ;;  %v258_v49 = vld [vmem:[%s1359_s8 + $0xe8] sm:$0xff] }
  0x65   : > { %644 = vmatpush.msrb.mxu3 %v368_v56  ;;  %602 = vmatpush.msrb.mxu1 %v383_v58  ;;  %v386_v50 = vld [vmem:[%s1359_s8 + $0x4e8] sm:$0xff]  ;;  %v273_v51 = vld [vmem:[%s1359_s8 + $0x160] sm:$0xff] }
  0x66   : > { %625 = vmatpush.msrb.mxu2 %v232_v59  ;;  %583 = vmatpush.msrb.mxu0 %v247_v63  ;;  %v401_v52 = vld [vmem:[%s1359_s8 + $0x560] sm:$0xff]  ;;  %v250_v53 = vld [vmem:[%s1359_s8 + $0xa8] sm:$0xff]  ;;  %v356_v63 = vld [vmem:[%s1359_s8 + $0x3f8] sm:$0xff] }
  0x67   : > { %645 = vmatpush.msrb.mxu3 %v360_v60  ;;  %626 = vmatmul.f32.vlgmr.msrb.gmra.mxu2 %v1472_v43  ;;  %v378_v54 = vld [vmem:[%s1359_s8 + $0x4a8] sm:$0xff]  ;;  %v265_v55 = vld [vmem:[%s1359_s8 + $0x120] sm:$0xff] }
  0x68   : > { %646 = vmatmul.f32.vlgmr.msrb.gmra.mxu3 %v1474_v44  ;;  %690 = vmatpush.msra.mxu2 %v354_v61  ;;  %v393_v56 = vld [vmem:[%s1359_s8 + $0x520] sm:$0xff]  ;;  %v242_v57 = vld [vmem:[%s1359_s8 + $0x68] sm:$0xff] }
  0x69   : > { %710 = vmatpush.msra.mxu3 %v482_v62  ;;  %603 = vmatpush.msrb.mxu1 %v375_v0  ;;  %v370_v58 = vld [vmem:[%s1359_s8 + $0x468] sm:$0xff]  ;;  %v257_v59 = vld [vmem:[%s1359_s8 + $0xe0] sm:$0xff]  ;;  %v484_v0 = vld [vmem:[%s1359_s8 + $0x7f8] sm:$0xff] }
  0x6a   : > { %691 = vmatpush.msra.mxu2 %v346_v1  ;;  %584 = vmatpush.msrb.mxu0 %v239_v3  ;;  %v385_v60 = vld [vmem:[%s1359_s8 + $0x4e0] sm:$0xff]  ;;  %v234_v61 = vld [vmem:[%s1359_s8 + $0x28] sm:$0xff]  ;;  %v348_v3 = vld [vmem:[%s1359_s8 + $0x3b8] sm:$0xff] }
  0x6b   : > { %711 = vmatpush.msra.mxu3 %v474_v2  ;;  %604 = vmatpush.msrb.mxu1 %v367_v4  ;;  %v362_v62 = vld [vmem:[%s1359_s8 + $0x428] sm:$0xff]  ;;  %v249_v1 = vld [vmem:[%s1359_s8 + $0xa0] sm:$0xff]  ;;  %v476_v4 = vld [vmem:[%s1359_s8 + $0x7b8] sm:$0xff] }
  0x6c   : > { %692 = vmatpush.msra.mxu2 %v338_v5  ;;  %585 = vmatpush.msrb.mxu0 %v231_v7  ;;  %v377_v2 = vld [vmem:[%s1359_s8 + $0x4a0] sm:$0xff]  ;;  %v340_v7 = vld [vmem:[%s1359_s8 + $0x378] sm:$0xff] }
  0x6d   : > { %712 = vmatpush.msra.mxu3 %v466_v6  ;;  %605 = vmatpush.msrb.mxu1 %v359_v8  ;;  %v241_v5 = vld [vmem:[%s1359_s8 + $0x60] sm:$0xff]  ;;  %v468_v8 = vld [vmem:[%s1359_s8 + $0x778] sm:$0xff] }
  0x6e   : > { %586 = vmatmul.f32.vlgmr.msrb.gmra.mxu0 %v1472_v43  ;;  %606 = vmatmul.f32.vlgmr.msrb.gmra.mxu1 %v1474_v44  ;;  %v369_v6 = vld [vmem:[%s1359_s8 + $0x460] sm:$0xff] }
  0x6f   : > { %650 = vmatpush.msra.mxu0 %v353_v9  ;;  %670 = vmatpush.msra.mxu1 %v481_v10  ;;  %v233_v9 = vld [vmem:[%s1359_s8 + $0x20] sm:$0xff] }
  0x70   : > { %693 = vmatpush.msra.mxu2 %v330_v11  ;;  %713 = vmatpush.msra.mxu3 %v458_v12  ;;  %v361_v10 = vld [vmem:[%s1359_s8 + $0x420] sm:$0xff]  ;;  %v355_v11 = vld [vmem:[%s1359_s8 + $0x3f0] sm:$0xff] }
  0x71   : > { %651 = vmatpush.msra.mxu0 %v345_v13  ;;  %671 = vmatpush.msra.mxu1 %v473_v14  ;;  %v483_v12 = vld [vmem:[%s1359_s8 + $0x7f0] sm:$0xff]  ;;  %v332_v13 = vld [vmem:[%s1359_s8 + $0x338] sm:$0xff] }
  0x72   : > { %694 = vmatpush.msra.mxu2 %v322_v15  ;;  %714 = vmatpush.msra.mxu3 %v450_v16  ;;  %v460_v14 = vld [vmem:[%s1359_s8 + $0x738] sm:$0xff]  ;;  %v347_v15 = vld [vmem:[%s1359_s8 + $0x3b0] sm:$0xff] }
  0x73   : > { %652 = vmatpush.msra.mxu0 %v337_v17  ;;  %672 = vmatpush.msra.mxu1 %v465_v18  ;;  %v475_v16 = vld [vmem:[%s1359_s8 + $0x7b0] sm:$0xff]  ;;  %v324_v17 = vld [vmem:[%s1359_s8 + $0x2f8] sm:$0xff] }
  0x74   : > { %695 = vmatpush.msra.mxu2 %v314_v19  ;;  %715 = vmatpush.msra.mxu3 %v442_v20  ;;  %v452_v18 = vld [vmem:[%s1359_s8 + $0x6f8] sm:$0xff]  ;;  %v339_v19 = vld [vmem:[%s1359_s8 + $0x370] sm:$0xff] }
  0x75   : > { %653 = vmatpush.msra.mxu0 %v329_v21  ;;  %673 = vmatpush.msra.mxu1 %v457_v22  ;;  %v467_v20 = vld [vmem:[%s1359_s8 + $0x770] sm:$0xff]  ;;  %v316_v21 = vld [vmem:[%s1359_s8 + $0x2b8] sm:$0xff] }
  0x76   : > { %696 = vmatpush.msra.mxu2 %v306_v23  ;;  %716 = vmatpush.msra.mxu3 %v434_v24  ;;  %v444_v22 = vld [vmem:[%s1359_s8 + $0x6b8] sm:$0xff]  ;;  %v331_v23 = vld [vmem:[%s1359_s8 + $0x330] sm:$0xff] }
  0x77   : > { %654 = vmatpush.msra.mxu0 %v321_v25  ;;  %674 = vmatpush.msra.mxu1 %v449_v26  ;;  %v459_v24 = vld [vmem:[%s1359_s8 + $0x730] sm:$0xff]  ;;  %v308_v25 = vld [vmem:[%s1359_s8 + $0x278] sm:$0xff] }
  0x78   : > { %697 = vmatpush.msra.mxu2 %v298_v27  ;;  %717 = vmatpush.msra.mxu3 %v426_v28  ;;  %v436_v26 = vld [vmem:[%s1359_s8 + $0x678] sm:$0xff]  ;;  %v323_v27 = vld [vmem:[%s1359_s8 + $0x2f0] sm:$0xff] }
  0x79   : > { %655 = vmatpush.msra.mxu0 %v313_v29  ;;  %675 = vmatpush.msra.mxu1 %v441_v30  ;;  %v451_v28 = vld [vmem:[%s1359_s8 + $0x6f0] sm:$0xff]  ;;  %v300_v29 = vld [vmem:[%s1359_s8 + $0x238] sm:$0xff] }
  0x7a   : > { %698 = vmatpush.msra.mxu2 %v290_v31  ;;  %718 = vmatpush.msra.mxu3 %v418_v32  ;;  %v428_v30 = vld [vmem:[%s1359_s8 + $0x638] sm:$0xff]  ;;  %v315_v31 = vld [vmem:[%s1359_s8 + $0x2b0] sm:$0xff] }
  0x7b   : > { %656 = vmatpush.msra.mxu0 %v305_v33  ;;  %676 = vmatpush.msra.mxu1 %v433_v34  ;;  %v443_v32 = vld [vmem:[%s1359_s8 + $0x6b0] sm:$0xff]  ;;  %v292_v33 = vld [vmem:[%s1359_s8 + $0x1f8] sm:$0xff] }
  0x7c   : > { %699 = vmatpush.msra.mxu2 %v282_v35  ;;  %719 = vmatpush.msra.mxu3 %v410_v36  ;;  %v420_v34 = vld [vmem:[%s1359_s8 + $0x5f8] sm:$0xff]  ;;  %v307_v35 = vld [vmem:[%s1359_s8 + $0x270] sm:$0xff] }
  0x7d   : > { %657 = vmatpush.msra.mxu0 %v297_v37  ;;  %677 = vmatpush.msra.mxu1 %v425_v38  ;;  %v435_v36 = vld [vmem:[%s1359_s8 + $0x670] sm:$0xff]  ;;  %v284_v37 = vld [vmem:[%s1359_s8 + $0x1b8] sm:$0xff] }
  0x7e   : > { %700 = vmatpush.msra.mxu2 %v274_v39  ;;  %720 = vmatpush.msra.mxu3 %v402_v40  ;;  %v412_v38 = vld [vmem:[%s1359_s8 + $0x5b8] sm:$0xff]  ;;  %v299_v39 = vld [vmem:[%s1359_s8 + $0x230] sm:$0xff] }
  0x7f   : > { %658 = vmatpush.msra.mxu0 %v289_v41  ;;  %678 = vmatpush.msra.mxu1 %v417_v42  ;;  %v427_v40 = vld [vmem:[%s1359_s8 + $0x630] sm:$0xff]  ;;  %v276_v41 = vld [vmem:[%s1359_s8 + $0x178] sm:$0xff] }
  0x80   : > { %701 = vmatpush.msra.mxu2 %v266_v45  ;;  %721 = vmatpush.msra.mxu3 %v394_v46  ;;  %v404_v42 = vld [vmem:[%s1359_s8 + $0x578] sm:$0xff]  ;;  %v291_v45 = vld [vmem:[%s1359_s8 + $0x1f0] sm:$0xff] }
  0x81   : > { %659 = vmatpush.msra.mxu0 %v281_v47  ;;  %679 = vmatpush.msra.mxu1 %v409_v48  ;;  %v419_v46 = vld [vmem:[%s1359_s8 + $0x5f0] sm:$0xff]  ;;  %v268_v47 = vld [vmem:[%s1359_s8 + $0x138] sm:$0xff] }
  0x82   : > { %702 = vmatpush.msra.mxu2 %v258_v49  ;;  %722 = vmatpush.msra.mxu3 %v386_v50  ;;  %v396_v48 = vld [vmem:[%s1359_s8 + $0x538] sm:$0xff]  ;;  %v283_v49 = vld [vmem:[%s1359_s8 + $0x1b0] sm:$0xff] }
  0x83   : > { %660 = vmatpush.msra.mxu0 %v273_v51  ;;  %680 = vmatpush.msra.mxu1 %v401_v52  ;;  %v411_v50 = vld [vmem:[%s1359_s8 + $0x5b0] sm:$0xff]  ;;  %v260_v51 = vld [vmem:[%s1359_s8 + $0xf8] sm:$0xff] }
  0x84   : > { %703 = vmatpush.msra.mxu2 %v250_v53  ;;  %723 = vmatpush.msra.mxu3 %v378_v54  ;;  %v388_v52 = vld [vmem:[%s1359_s8 + $0x4f8] sm:$0xff]  ;;  %v275_v53 = vld [vmem:[%s1359_s8 + $0x170] sm:$0xff] }
  0x85   : > { %661 = vmatpush.msra.mxu0 %v265_v55  ;;  %681 = vmatpush.msra.mxu1 %v393_v56  ;;  %v403_v54 = vld [vmem:[%s1359_s8 + $0x570] sm:$0xff]  ;;  %v252_v55 = vld [vmem:[%s1359_s8 + $0xb8] sm:$0xff] }
  0x86   : > { %704 = vmatpush.msra.mxu2 %v242_v57  ;;  %724 = vmatpush.msra.mxu3 %v370_v58  ;;  %v380_v56 = vld [vmem:[%s1359_s8 + $0x4b8] sm:$0xff]  ;;  %v267_v57 = vld [vmem:[%s1359_s8 + $0x130] sm:$0xff] }
  0x87   : > { %662 = vmatpush.msra.mxu0 %v257_v59  ;;  %682 = vmatpush.msra.mxu1 %v385_v60  ;;  %v395_v58 = vld [vmem:[%s1359_s8 + $0x530] sm:$0xff]  ;;  %v244_v59 = vld [vmem:[%s1359_s8 + $0x78] sm:$0xff] }
  0x88   : > { %705 = vmatpush.msra.mxu2 %v234_v61  ;;  %725 = vmatpush.msra.mxu3 %v362_v62  ;;  %v372_v60 = vld [vmem:[%s1359_s8 + $0x478] sm:$0xff]  ;;  %v259_v61 = vld [vmem:[%s1359_s8 + $0xf0] sm:$0xff] }
  0x89   : > { %663 = vmatpush.msra.mxu0 %v249_v1  ;;  %683 = vmatpush.msra.mxu1 %v377_v2  ;;  %v387_v62 = vld [vmem:[%s1359_s8 + $0x4f0] sm:$0xff] }
  0x8a   : > { %770 = vmatpush.msrb.mxu2 %v356_v63  ;;  %790 = vmatpush.msrb.mxu3 %v484_v0  ;;  %v236_v63 = vld [vmem:[%s1359_s8 + $0x38] sm:$0xff]  ;;  %v251_v1 = vld [vmem:[%s1359_s8 + $0xb0] sm:$0xff] }
  0x8b   : > { %664 = vmatpush.msra.mxu0 %v241_v5  ;;  %684 = vmatpush.msra.mxu1 %v369_v6  ;;  %v364_v0 = vld [vmem:[%s1359_s8 + $0x438] sm:$0xff]  ;;  %v379_v2 = vld [vmem:[%s1359_s8 + $0x4b0] sm:$0xff] }
  0x8c   : > { %771 = vmatpush.msrb.mxu2 %v348_v3  ;;  %791 = vmatpush.msrb.mxu3 %v476_v4  ;;  %v243_v3 = vld [vmem:[%s1359_s8 + $0x70] sm:$0xff] }
  0x8d   : > { %665 = vmatpush.msra.mxu0 %v233_v9  ;;  %685 = vmatpush.msra.mxu1 %v361_v10  ;;  %v371_v4 = vld [vmem:[%s1359_s8 + $0x470] sm:$0xff] }
  0x8e   : > { %772 = vmatpush.msrb.mxu2 %v340_v7  ;;  %792 = vmatpush.msrb.mxu3 %v468_v8  ;;  %v235_v5 = vld [vmem:[%s1359_s8 + $0x30] sm:$0xff] }
  0x8f   : > { %730 = vmatpush.msrb.mxu0 %v355_v11  ;;  %750 = vmatpush.msrb.mxu1 %v483_v12  ;;  %v363_v6 = vld [vmem:[%s1359_s8 + $0x430] sm:$0xff] }
  0x90   : > { %773 = vmatpush.msrb.mxu2 %v332_v13  ;;  %793 = vmatpush.msrb.mxu3 %v460_v14 }
  0x91   : > { %731 = vmatpush.msrb.mxu0 %v347_v15  ;;  %751 = vmatpush.msrb.mxu1 %v475_v16 }
  0x92   : > { %774 = vmatpush.msrb.mxu2 %v324_v17  ;;  %794 = vmatpush.msrb.mxu3 %v452_v18 }
  0x93   : > { %732 = vmatpush.msrb.mxu0 %v339_v19  ;;  %752 = vmatpush.msrb.mxu1 %v467_v20 }
  0x94   : > { %775 = vmatpush.msrb.mxu2 %v316_v21  ;;  %795 = vmatpush.msrb.mxu3 %v444_v22 }
  0x95   : > { %733 = vmatpush.msrb.mxu0 %v331_v23  ;;  %753 = vmatpush.msrb.mxu1 %v459_v24 }
  0x96   : > { %776 = vmatpush.msrb.mxu2 %v308_v25  ;;  %796 = vmatpush.msrb.mxu3 %v436_v26 }
  0x97   : > { %734 = vmatpush.msrb.mxu0 %v323_v27  ;;  %754 = vmatpush.msrb.mxu1 %v451_v28 }
  0x98   : > { %777 = vmatpush.msrb.mxu2 %v300_v29  ;;  %797 = vmatpush.msrb.mxu3 %v428_v30 }
  0x99   : > { %735 = vmatpush.msrb.mxu0 %v315_v31  ;;  %755 = vmatpush.msrb.mxu1 %v443_v32 }
  0x9a   : > { %778 = vmatpush.msrb.mxu2 %v292_v33  ;;  %798 = vmatpush.msrb.mxu3 %v420_v34 }
  0x9b   : > { %736 = vmatpush.msrb.mxu0 %v307_v35  ;;  %756 = vmatpush.msrb.mxu1 %v435_v36 }
  0x9c   : > { %779 = vmatpush.msrb.mxu2 %v284_v37  ;;  %799 = vmatpush.msrb.mxu3 %v412_v38 }
  0x9d   : > { %737 = vmatpush.msrb.mxu0 %v299_v39  ;;  %757 = vmatpush.msrb.mxu1 %v427_v40 }
  0x9e   : > { %780 = vmatpush.msrb.mxu2 %v276_v41  ;;  %800 = vmatpush.msrb.mxu3 %v404_v42 }
  0x9f   : > { %738 = vmatpush.msrb.mxu0 %v291_v45  ;;  %758 = vmatpush.msrb.mxu1 %v419_v46 }
  0xa0   : > { %781 = vmatpush.msrb.mxu2 %v268_v47  ;;  %801 = vmatpush.msrb.mxu3 %v396_v48 }
  0xa1   : > { %706 = vmatmul.f32.vlgmr.msra.gmra.mxu2 %v1472_v43  ;;  %726 = vmatmul.f32.vlgmr.msra.gmra.mxu3 %v1474_v44 }
  0xa2   : > { %739 = vmatpush.msrb.mxu0 %v283_v49  ;;  %759 = vmatpush.msrb.mxu1 %v411_v50 }
  0xa3   : > { %782 = vmatpush.msrb.mxu2 %v260_v51  ;;  %802 = vmatpush.msrb.mxu3 %v388_v52 }
  0xa4   : > { %740 = vmatpush.msrb.mxu0 %v275_v53  ;;  %760 = vmatpush.msrb.mxu1 %v403_v54 }
  0xa5   : > { %783 = vmatpush.msrb.mxu2 %v252_v55  ;;  %803 = vmatpush.msrb.mxu3 %v380_v56 }
  0xa6   : > { %741 = vmatpush.msrb.mxu0 %v267_v57  ;;  %761 = vmatpush.msrb.mxu1 %v395_v58 }
  0xa7   : > { %784 = vmatpush.msrb.mxu2 %v244_v59  ;;  %804 = vmatpush.msrb.mxu3 %v372_v60 }
  0xa8   : > { %666 = vmatmul.f32.vlgmr.msra.gmra.mxu0 %v1472_v43  ;;  %686 = vmatmul.f32.vlgmr.msra.gmra.mxu1 %v1474_v44 }
  0xa9   : > { %742 = vmatpush.msrb.mxu0 %v259_v61  ;;  %762 = vmatpush.msrb.mxu1 %v387_v62 }
  0xaa   : > { %785 = vmatpush.msrb.mxu2 %v236_v63  ;;  %805 = vmatpush.msrb.mxu3 %v364_v0 }
  0xab   : > { %786 = vmatmul.f32.vlgmr.msrb.gmra.mxu2 %v1472_v43  ;;  %806 = vmatmul.f32.vlgmr.msrb.gmra.mxu3 %v1474_v44 }
  0xac   : > { %743 = vmatpush.msrb.mxu0 %v251_v1  ;;  %763 = vmatpush.msrb.mxu1 %v379_v2 }
  0xae   : > { %744 = vmatpush.msrb.mxu0 %v243_v3  ;;  %764 = vmatpush.msrb.mxu1 %v371_v4 }
  0xb0   : > { %745 = vmatpush.msrb.mxu0 %v235_v5  ;;  %765 = vmatpush.msrb.mxu1 %v363_v6 }
  0xb1   : > { %746 = vmatmul.f32.vlgmr.msrb.gmra.mxu0 %v1472_v43  ;;  %766 = vmatmul.f32.vlgmr.msrb.gmra.mxu1 %v1474_v44 }
  0xdd   : > { %v567_v8 = vpop.f32.mrf.mxu3 }
  0xde   : > { %v547_v7 = vpop.f32.mrf.mxu2 }
  0xdf   : > { %v507_v9 = vpop.f32.mrf.mxu0  ;;  %v568_v21 = vadd.f32 %v567_v8, %v547_v7 }
  0xe0   : > { %v527_v10 = vpop.f32.mrf.mxu1 }
  0xe1   : > { %v528_v26 = vadd.f32 %v527_v10, %v507_v9  ;;  %v818_v30 = vrot.slane %v568_v21, 7 }
  0xe3   : > { %v826_v37 = vsel %vm825_vm1, %v528_v26, %v818_v30 }
  0xea   : > { %v627_v11 = vpop.f32.mrf.mxu2 }
  0xeb   : > { %v647_v12 = vpop.f32.mrf.mxu3  ;;  %v587_v13 = vpop.f32.mrf.mxu0 }
  0xec   : > { %v607_v14 = vpop.f32.mrf.mxu1  ;;  %v648_v20 = vadd.f32 %v647_v12, %v627_v11 }
  0xed   : > { %v608_v19 = vadd.f32 %v607_v14, %v587_v13 }
  0xee   : > { %v820_v24 = vrot.slane %v648_v20, 5 }
  0xef   : > { %v819_v43 = vrot.slane %v608_v19, 6 }
  0xf1   : > { %v828_v35 = vsel %vm827_vm0, %v819_v43, %v820_v24 }
  0xf2   : > { %v830_v40 = vsel %vm829_vm4, %v826_v37, %v828_v35 }
 0x124   : > { %v707_v15 = vpop.f32.mrf.mxu2  ;;  %v727_v16 = vpop.f32.mrf.mxu3 }
 0x125   : > { %v667_v17 = vpop.f32.mrf.mxu0  ;;  %v687_v18 = vpop.f32.mrf.mxu1  ;;  %v728_v23 = vadd.f32 %v727_v16, %v707_v15 }
 0x126   : > { %v688_v22 = vadd.f32 %v687_v18, %v667_v17 }
 0x127   : > { %v822_v32 = vrot.slane %v728_v23, 3 }
 0x128   : > { %v821_v31 = vrot.slane %v688_v22, 4 }
 0x12a   : > { %v832_v38 = vsel %vm831_vm2, %v821_v31, %v822_v32 }
 0x12e   : > { %v747_v44 = vpop.f32.mrf.mxu0  ;;  %v767_v25 = vpop.f32.mrf.mxu1 }
 0x12f   : > { %v768_v27 = vadd.f32 %v767_v25, %v747_v44  ;;  %v787_v28 = vpop.f32.mrf.mxu2  ;;  %v807_v29 = vpop.f32.mrf.mxu3 }
 0x130   : > { %v808_v33 = vadd.f32 %v807_v29, %v787_v28 }
 0x131   : > { %v823_v34 = vrot.slane %v768_v27, 2 }
 0x132   : > { %v824_v36 = vrot.slane %v808_v33, 1 }
 0x134   : > { %v834_v39 = vsel %vm833_vm3, %v823_v34, %v824_v36 }
 0x135   : > { %v836_v41 = vsel %vm835_vm5, %v832_v38, %v834_v39 }
 0x136   : > { %v838_v42 = vsel %vm837_vm6, %v830_v40, %v836_v41 }
 0x137   : > { %v847_v45 = vperm.slane %v838_v42, 0  ;;  %v848_v46 = vperm.slane %v838_v42, 1  ;;  %v849_v47 = vperm.slane %v838_v42, 2  ;;  %v850_v48 = vperm.slane %v838_v42, 3 }
 0x138   : > { %v851_v52 = vperm.slane %v838_v42, 4  ;;  %v852_v55 = vperm.slane %v838_v42, 5  ;;  %v853_v58 = vperm.slane %v838_v42, 6  ;;  %v854_v61 = vperm.slane %v838_v42, 7 }
 0x139   : > { %v863_v49 = vsel %vm825_vm1, %v847_v45, 0.0  ;;  %v864_v50 = vsel %vm825_vm1, %v848_v46, 0.0  ;;  %v866_v53 = vsel %vm825_vm1, %v849_v47, 0.0  ;;  %v868_v56 = vsel %vm825_vm1, %v850_v48, 0.0 }
 0x13a   : > { %v865_v51 = vadd.f32 %v864_v50, %v863_v49  ;;  %v870_v59 = vsel %vm825_vm1, %v851_v52, 0.0  ;;  %v872_v62 = vsel %vm825_vm1, %v852_v55, 0.0  ;;  %v874_v0 = vsel %vm825_vm1, %v853_v58, 0.0 }
 0x13b   : > { %v876_v2 = vsel %vm825_vm1, %v854_v61, 0.0 }
 0x13c   : > { %v867_v54 = vadd.f32 %v866_v53, %v865_v51 }
 0x13e   : > { %v869_v57 = vadd.f32 %v868_v56, %v867_v54 }
 0x140   : > { %v871_v60 = vadd.f32 %v870_v59, %v869_v57 }
 0x142   : > { %v873_v63 = vadd.f32 %v872_v62, %v871_v60 }
 0x144   : > { %v875_v1 = vadd.f32 %v874_v0, %v873_v63 }
 0x146   : > { %v877_v3 = vadd.f32 %v876_v2, %v875_v1 }
 0x148   : > { %878 = vadd.xlane.f32.xlu0 %v877_v3 }
 0x1bb   : > { %v879_v4 = vpop.xlane.xlu0 %878 }
 0x1bc   : > { %v880_v5 = vrot.slane %v879_v4, 4 }
 0x1be   : > { %v881_v6 = vadd.f32 %v880_v5, %v879_v4 }
 0x1c0   : > { %v882_v7 = vrot.slane %v881_v6, 2 }
 0x1c2   : > { %v883_v8 = vadd.f32 %v882_v7, %v881_v6 }
 0x1c4   : > { %v884_v9 = vrot.slane %v883_v8, 1 }
 0x1c6   : > { %v885_v10 = vadd.f32 %v884_v9, %v883_v8 }
 0x1c8   : > { %1019 = vpush %v885_v10 }
 0x1f9   : > { %s1020_s19 = spop %1019 }
 0x1fa   : > { %v887_v11 = vstv %s1020_s19 }
 0x1fb   : > { %888 = vst [vmem:[%s218_s18] sm:$0x1] %v887_v11 }
 0x1fc   : > { %1177 = shalt.err (!%p1174_p13)
}
 0x1fd   : > { %1025 = dma.vmem_to_hbm [thread:$0]  (%p1306_p9), %s901_s20, 16, %s903_s26, %s890_s27  }
 0x1fe PF: > { %s914_s3 = sand.u32 1, %s1216_s9   ;;  %p1035_p0 = pnand %p1005_p12, %p1313_p11 }
 0x1ff   : > { %s915_s25 = scalar_lea.sflag [#allocation5], %s914_s3 }
 0x200   : > { %p1036_p1 = pneg %p1035_p0 }
 0x202   : > { %1211 = dma.done.wait (%p1036_p1), %s915_s25, 16  }
 0x203   : > { %1213 = vsyncadd (%p1036_p1), %s915_s25, 4294967280  ;;  %s21_s14 = sadd.s32 1, %s1236_s14   ;;  %s1698_s9 = smov %s1220_s10 }
 0x204   : > { %p18_p2 = scmp.ge.s32.totalorder %s21_s14, 4   ;;  %s1699_s10 = smov %s1224_s11 }
 0x205   : > { %s1700_s11 = smov %s1311_s23  ;;  %s1701_s12 = smov %s1232_s13 }
 0x206   : > { %s1702_s13 = smov %s1704_s17  ;;  %20 = sbr.rel (!%p18_p2) target bundleno = 8 (0x8), region = 94 }
 0x20b   :  { %920 = vsyncpa [#allocation4], 1 }
 0x20c   :  { %922 = vsyncpa [#allocation4 + $0x1], 1 }
 0x20d   :  { %923 = vsyncpa [#allocation7], 1 }
 0x20e   :  { %925 = vsyncpa [#allocation7 + $0x1], 1 }
 0x20f   :  { %926 = vsyncpa [#allocation5], 1 }
 0x210   :  { %928 = vsyncpa [#allocation5 + $0x1], 1 }

</bundles_post_ra>
